<compile_context>
chip_gen: v5e
topology: v5e:2x2
jax: 0.10.0
libtpu: 0.0.40
codegen_flags: <defaults>
</compile_context>

<pallas_src>
import jax
import jax.numpy as jnp
from jax.experimental import pallas as pl
from jax.experimental.pallas import tpu as pltpu


# --------------------------- Pallas FM-score kernel ---------------------------

def _fm_score_kernel(w_ref, v_ref, s_ref):
    # Upcast in-kernel so HBM carries the native dtype (e.g. bf16) while the
    # squares and reductions run in f32.
    w = w_ref[...].astype(jnp.float32)                    # (F, bB)
    v = v_ref[...].astype(jnp.float32)                    # (F, K, bB)

    w_sum = jnp.sum(w, axis=0, keepdims=True)             # (1, bB)
    v_sum = jnp.sum(v, axis=0)                            # (K, bB)   leading-axis VPU adds
    v_sq_sum = jnp.sum(v * v, axis=0)                     # (K, bB)
    pair = 0.5 * jnp.sum(v_sum * v_sum - v_sq_sum,
                         axis=0, keepdims=True)           # (1, bB)

    s_ref[...] = w_sum + pair                             # lane-dense store


def _choose_block_b(B, max_block=2048):
    """Largest lane-aligned (multiple-of-128) batch tile that divides B."""
    if B % 128 != 0 or B <= 128:
        return B                      # small / ragged batch: one full-extent block
    blk = min(B, max_block)
    blk -= blk % 128
    while blk > 128 and B % blk != 0:
        blk -= 128
    return blk if B % blk == 0 else B


def fm_score(w0, w, v, *, block_b=None):
    """s = w0 + w.sum(1) + 0.5 * ((v.sum(1))**2 - (v**2).sum(1)).sum(-1)

    w : (B, F), v : (B, F, K) in their native dtype. Returns (B,) float32.
    """
    B, F = w.shape
    K = v.shape[-1]
    if block_b is None:
        block_b = _choose_block_b(B)
    assert B % block_b == 0, "batch must divide batch tile"
    grid = (B // block_b,)

    # Layout plumbing: batch on the lane (last) axis. These transposes fold
    # into XLA layout assignment of the preceding gather/concat.
    w_t = jnp.transpose(w, (1, 0))          # (F, B)
    v_t = jnp.transpose(v, (1, 2, 0))       # (F, K, B)

    bytes_accessed = (w_t.size * w_t.dtype.itemsize
                      + v_t.size * v_t.dtype.itemsize
                      + B * 4)
    cost = pl.CostEstimate(flops=int(B * (3 * F * K + F + 3 * K)),
                           transcendentals=0,
                           bytes_accessed=int(bytes_accessed))

    s2d = pl.pallas_call(
        _fm_score_kernel,
        out_shape=jax.ShapeDtypeStruct((1, B), jnp.float32),
        grid_spec=pltpu.PrefetchScalarGridSpec(
            num_scalar_prefetch=0,
            grid=grid,
            in_specs=[
                pl.BlockSpec((F, block_b), lambda b: (0, b)),        # linear terms
                pl.BlockSpec((F, K, block_b), lambda b: (0, 0, b)),  # factor vectors
            ],
            out_specs=pl.BlockSpec((1, block_b), lambda b: (0, b)),
        ),
        compiler_params=pltpu.CompilerParams(
            dimension_semantics=("parallel",),
            vmem_limit_bytes=32 * 1024 * 1024,
        ),
        cost_estimate=cost,
    )(w_t, v_t)

    # w0 stays out of the VMEM-tiled input path: fold it in after the call.
    return s2d[0] + jnp.asarray(w0, jnp.float32).reshape(-1)[0]


# ----------------------------- parameter setup ------------------------------

def init_params(key, n_users, n_items, n_feat_item, k, init=0.05):
    """Mirrors UserItemFM._init_embeddings: (k+1)-dim embeddings, last column
    (the per-entity linear weight) zero-initialized, w0 = 0."""
    ku, ki, kf = jax.random.split(key, 3)

    def emb(rng, n):
        w = jnp.zeros((n, k + 1), jnp.float32)
        return w.at[:, :-1].set(init * jax.random.normal(rng, (n, k), jnp.float32))

    return {
        "w0": jnp.zeros((1,), jnp.float32),
        "user": emb(ku, n_users),
        "item": emb(ki, n_items),
        "feat_item": emb(kf, n_feat_item),   # dense item-feature embedding
    }


# ------------------------------ forward (glue) -------------------------------

def _retrieve_factors(params, u, i, feats):
    """JAX port of UserItemFM._retrieve_factors (dense-feature path)."""
    user = params["user"][u]                 # (B, NU, k+1)
    item = params["item"][i]                 # (B, NI, k+1)
    w = jnp.concatenate([user[..., -1], item[..., -1]], axis=1)    # (B, NU+NI)
    v = jnp.concatenate([user[..., :-1], item[..., :-1]], axis=1)  # (B, NU+NI, k)
    for entity, feat in feats.items():
        key = f"feat_{entity}"
        if key in params:
            # dense path: weight[None] * feat[..., None]
            f = params[key][None] * feat[..., None]                # (B, NF, k+1)
            w = jnp.concatenate([w, f[..., -1]], axis=1)
            v = jnp.concatenate([v, f[..., :-1]], axis=1)
            # TODO(synk): sparse-feature (embedding-bag) branch not implemented.
    return w, v


def uifm_forward(params, u, i, feats, *, block_b=None):
    """JAX/Pallas equivalent of UserItemFM.forward -> (s, [w, v])."""
    w, v = _retrieve_factors(params, u, i, feats)
    s = fm_score(params["w0"], w, v, block_b=block_b)
    return s, [w, v]


def uifm_forward_ref(params, u, i, feats):
    """Pure-JAX reference of the PyTorch forward (for correctness check)."""
    w, v = _retrieve_factors(params, u, i, feats)
    w_ = w.sum(1)
    v_ = ((v.sum(1)) ** 2 - (v ** 2).sum(1)).sum(-1) * 0.5
    return params["w0"][0] + w_ + v_


# ----------------------------------- main ------------------------------------

if __name__ == "__main__":
    key = jax.random.PRNGKey(0)
    kp, ku, ki, kx = jax.random.split(key, 4)

    # small, forward-consistent shapes
    B = 512          # batch (lane-aligned so the batch tile can be tiled)
    NU, NI = 1, 3    # user-id fields, item-id fields (e.g. 1 pos + 2 negs)
    n_users, n_items = 64, 32
    n_feat_item = 6
    k = 8            # latent dim (embedding dim = k + 1)  ->  F = 10, K = 8

    params = init_params(kp, n_users, n_items, n_feat_item, k)

    u = jax.random.randint(ku, (B, NU), 0, n_users)             # user ids
    i = jax.random.randint(ki, (B, NI), 0, n_items)             # item ids
    xi = jax.random.uniform(kx, (B, n_feat_item), jnp.float32)  # item feature tensor
    feats = {"item": xi}

    s_ref = jax.block_until_ready(uifm_forward_ref(params, u, i, feats))

    # 1) default (auto) batch tile
    s, (w, v) = uifm_forward(params, u, i, feats)
    s = jax.block_until_ready(s)
    assert s.shape == (B,)
    assert jnp.allclose(s, s_ref, atol=1e-5, rtol=1e-5), (s, s_ref)

    # 2) explicit 128-row tile -> 4-step pipelined grid
    s_tiled, _ = uifm_forward(params, u, i, feats, block_b=128)
    s_tiled = jax.block_until_ready(s_tiled)
    assert jnp.allclose(s_tiled, s_ref, atol=1e-5, rtol=1e-5), (s_tiled, s_ref)

    print("KERNEL_OK")
</pallas_src>

<mosaic_0001>
module attributes {stable_mosaic.version = 11 : i64} {
  func.func @_fm_score_kernel(%arg0: i32, %arg1: memref<10x512xf32, #tpu.memory_space<vmem>>, %arg2: memref<10x8x512xf32, #tpu.memory_space<vmem>>, %arg3: memref<1x512xf32, #tpu.memory_space<vmem>>) attributes {dimension_semantics = [#tpu.dimension_semantics<parallel>], iteration_bounds = array<i64: 1>, scalar_prefetch = 0 : i64, scratch_operands = 0 : i64, tpu.core_type = #tpu.core_type<tc>, window_params = [{transform_indices = @transform_0, window_bounds = array<i64: 10, 512>}, {transform_indices = @transform_1, window_bounds = array<i64: 10, 8, 512>}, {transform_indices = @transform_2, window_bounds = array<i64: 1, 512>}]} {
    %c0 = arith.constant 0 : index
    %c0_0 = arith.constant 0 : index
    %0 = vector.load %arg1[%c0, %c0_0] : memref<10x512xf32, #tpu.memory_space<vmem>>, vector<10x512xf32>
    %c0_1 = arith.constant 0 : index
    %c0_2 = arith.constant 0 : index
    %c0_3 = arith.constant 0 : index
    %1 = vector.load %arg2[%c0_1, %c0_2, %c0_3] : memref<10x8x512xf32, #tpu.memory_space<vmem>>, vector<10x8x512xf32>
    %cst = arith.constant dense<0.000000e+00> : vector<512xf32>
    %2 = vector.multi_reduction <add>, %0, %cst [0] : vector<10x512xf32> to vector<512xf32>
    %3 = vector.shape_cast %2 : vector<512xf32> to vector<1x512xf32>
    %cst_4 = arith.constant dense<0.000000e+00> : vector<8x512xf32>
    %4 = vector.multi_reduction <add>, %1, %cst_4 [0] : vector<10x8x512xf32> to vector<8x512xf32>
    %5 = arith.mulf %1, %1 : vector<10x8x512xf32>
    %cst_5 = arith.constant dense<0.000000e+00> : vector<8x512xf32>
    %6 = vector.multi_reduction <add>, %5, %cst_5 [0] : vector<10x8x512xf32> to vector<8x512xf32>
    %7 = arith.mulf %4, %4 : vector<8x512xf32>
    %8 = arith.subf %7, %6 : vector<8x512xf32>
    %cst_6 = arith.constant dense<0.000000e+00> : vector<512xf32>
    %9 = vector.multi_reduction <add>, %8, %cst_6 [0] : vector<8x512xf32> to vector<512xf32>
    %10 = vector.shape_cast %9 : vector<512xf32> to vector<1x512xf32>
    %cst_7 = arith.constant 5.000000e-01 : f32
    %11 = vector.broadcast %cst_7 : f32 to vector<1x512xf32>
    %12 = arith.mulf %11, %10 : vector<1x512xf32>
    %13 = arith.addf %3, %12 : vector<1x512xf32>
    %c0_8 = arith.constant 0 : index
    %c0_9 = arith.constant 0 : index
    %14 = vector.load %arg3[%c0_8, %c0_9] : memref<1x512xf32, #tpu.memory_space<vmem>>, vector<1x512xf32>
    tpu.vector_store %arg3[%c0_8, %c0_9], %13 {strides = array<i32>} : memref<1x512xf32, #tpu.memory_space<vmem>>, vector<1x512xf32>,
    return
  }
  func.func @transform_0(%arg0: i32) -> (i32, i32) {
    %c0_i32 = arith.constant 0 : i32
    %c0_i32_0 = arith.constant 0 : i32
    return %c0_i32, %arg0 : i32, i32
  }
  func.func @transform_1(%arg0: i32) -> (i32, i32, i32) {
    %c0_i32 = arith.constant 0 : i32
    %c0_i32_0 = arith.constant 0 : i32
    %c0_i32_1 = arith.constant 0 : i32
    return %c0_i32, %c0_i32_0, %arg0 : i32, i32, i32
  }
  func.func @transform_2(%arg0: i32) -> (i32, i32) {
    %c0_i32 = arith.constant 0 : i32
    %c0_i32_0 = arith.constant 0 : i32
    return %c0_i32, %arg0 : i32, i32
  }
}

</mosaic_0001>

<bundles_post_ra>
// kernel: tpu_custom_call.1
= control target key start
LH: loop header
LB: loop body
LE: loop exit
PB: predicated region body
PF: predicated region fallthrough
CT: control target
= control target key end

     0   :  { %7 = vsyncpa [#allocation3], 0  ;;  %s662_s0 = inlined_call_operand.hbm [shape: f32[10,512], index: 0, kind: input, shape index: {}]   ;;  %s663_s1 = inlined_call_operand.hbm [shape: f32[10,8,512], index: 1, kind: input, shape index: {}]   ;;  %s664_s2 = inlined_call_operand.hbm [shape: f32[1,512], index: 2, kind: output, shape index: {}]  }
   0x1   :  { %8 = vsyncpa [#allocation6], 0 }
   0x2   :  { %9 = vsyncpa [#allocation4], 0  ;;  %s14_s11 = sshll.u32 %s662_s0, 4  ;;  %s396_s12 = smov [#allocation2]   ;;  %s15_s11 = int_to_ptr.hbm [resolvable:$true] %s14_s11 }
   0x3   :  { %s16_s13 = sshll.u32 %s396_s12, 4  ;;  %s27_s16 = sshll.u32 %s663_s1, 4  ;;  %s17_s13 = int_to_ptr.vmem [resolvable:$true] %s16_s13  ;;  %s28_s16 = int_to_ptr.hbm [resolvable:$true] %s27_s16 }
   0x4   :  { %s397_s17 = smov 512   ;;  %s398_s18 = smov 32  }
   0x5   :  { %22 = dma.hbm_to_vmem [thread:$0]  %s15_s11, 1024, %s17_s13, [#allocation3], %s397_s17, %s397_s17, %s398_s18  }
   0x6   :  { %s399_s19 = smov [#allocation5]  }
   0x7   :  { %s29_s20 = sshll.u32 %s399_s19, 4  ;;  %s30_s20 = int_to_ptr.vmem [resolvable:$true] %s29_s20 }
   0x8   :  { %35 = dma.hbm_to_vmem [thread:$0]  %s28_s16, 5120, %s30_s20, [#allocation6], %s397_s17, %s397_s17, %s398_s18  }
   0x9   :  { %390 = dma.done.wait [#allocation3], 1024  }
   0xa   :  { %391 = vsyncadd [#allocation3], 4294966272 }
   0xb   :  { %392 = dma.done.wait [#allocation6], 5120  }
   0xc   :  { %393 = vsyncadd [#allocation6], 4294962176  ;;  %v422_v0 = vld [vmem:[#allocation5] sm:$0xff]  ;;  %v424_v1 = vld [vmem:[#allocation5 + $0x8] sm:$0xff]  ;;  %vm92_vm0 = vcmask 1041408   ;;  %vm284_vm1 = vcmask 1040384  }
   0xd   :  { %v426_v2 = vld [vmem:[#allocation5 + $0x10] sm:$0xff]  ;;  %v428_v3 = vld [vmem:[#allocation5 + $0x18] sm:$0xff]  ;;  %v430_v4 = vld [vmem:[#allocation5 + $0x20] sm:$0xff]  ;;  %vm286_vm2 = vcmask 1042434   ;;  %s400_s0 = smov [#allocation7]   ;;  %s302_s23 = sshll.u32 %s664_s2, 4  ;;  %s303_s23 = int_to_ptr.hbm [resolvable:$true] %s302_s23 }
   0xe   :  { %v432_v5 = vld [vmem:[#allocation5 + $0x28] sm:$0xff]  ;;  %v434_v6 = vld [vmem:[#allocation5 + $0x30] sm:$0xff]  ;;  %v436_v7 = vld [vmem:[#allocation5 + $0x38] sm:$0xff]  ;;  %v125_v10 = vadd.f32 %v430_v4, %v422_v0  ;;  %s300_s1 = sshll.u32 %s400_s0, 4  ;;  %s301_s1 = int_to_ptr.vmem [resolvable:$true] %s300_s1 }
   0xf   :  { %v438_v8 = vld [vmem:[#allocation5 + $0x40] sm:$0xff]  ;;  %v440_v9 = vld [vmem:[#allocation5 + $0x48] sm:$0xff]  ;;  %v134_v11 = vadd.f32 %v432_v5, %v424_v1  ;;  %v143_v12 = vadd.f32 %v434_v6, %v426_v2  ;;  %v448_v13 = vld [vmem:[#allocation5 + $0x50] sm:$0xff]  ;;  %v152_v16 = vadd.f32 %v436_v7, %v428_v3 }
  0x10   :  { %v450_v14 = vld [vmem:[#allocation5 + $0x58] sm:$0xff]  ;;  %v452_v15 = vld [vmem:[#allocation5 + $0x60] sm:$0xff]  ;;  %v456_v18 = vld [vmem:[#allocation5 + $0x68] sm:$0xff]  ;;  %v126_v21 = vadd.f32 %v125_v10, %v438_v8 }
  0x11   :  { %v48_v17 = vld [vmem:[#allocation2 + $0x20] sm:$0x3]  ;;  %v458_v19 = vld [vmem:[#allocation5 + $0x70] sm:$0xff]  ;;  %v460_v20 = vld [vmem:[#allocation5 + $0x78] sm:$0xff]  ;;  %v135_v22 = vadd.f32 %v134_v11, %v440_v9  ;;  %v144_v23 = vadd.f32 %v143_v12, %v448_v13  ;;  %v153_v27 = vadd.f32 %v152_v16, %v450_v14 }
  0x12   :  { %v465_v24 = vld [vmem:[#allocation5 + $0x80] sm:$0xff]  ;;  %v467_v25 = vld [vmem:[#allocation5 + $0x88] sm:$0xff]  ;;  %v469_v26 = vld [vmem:[#allocation5 + $0x90] sm:$0xff]  ;;  %v127_v31 = vadd.f32 %v126_v21, %v452_v15  ;;  %v93_v47 = vsel %vm92_vm0, %v48_v17, 0.0 }
  0x13   :  { %v49_v28 = vld [vmem:[#allocation2 + $0x28] sm:$0x3]  ;;  %v50_v29 = vld [vmem:[#allocation2 + $0x30] sm:$0x3]  ;;  %v472_v30 = vld [vmem:[#allocation5 + $0x98] sm:$0xff]  ;;  %v136_v32 = vadd.f32 %v135_v22, %v456_v18  ;;  %v145_v33 = vadd.f32 %v144_v23, %v458_v19  ;;  %v154_v37 = vadd.f32 %v153_v27, %v460_v20 }
  0x14   :  { %v477_v34 = vld [vmem:[#allocation5 + $0xa0] sm:$0xff]  ;;  %v479_v35 = vld [vmem:[#allocation5 + $0xa8] sm:$0xff]  ;;  %v481_v36 = vld [vmem:[#allocation5 + $0xb0] sm:$0xff]  ;;  %v128_v41 = vadd.f32 %v127_v31, %v465_v24  ;;  %v101_v48 = vsel %vm92_vm0, %v49_v28, 0.0  ;;  %v109_v53 = vsel %vm92_vm0, %v50_v29, 0.0 }
  0x15   :  { %v44_v38 = vld [vmem:[#allocation2] sm:$0xff]  ;;  %v51_v39 = vld [vmem:[#allocation2 + $0x38] sm:$0x3]  ;;  %v137_v42 = vadd.f32 %v136_v32, %v467_v25  ;;  %v146_v43 = vadd.f32 %v145_v33, %v469_v26  ;;  %v491_v45 = vld [vmem:[#allocation5 + $0xc8] sm:$0xff]  ;;  %v155_v49 = vadd.f32 %v154_v37, %v472_v30 }
  0x16   :  { %v484_v40 = vld [vmem:[#allocation5 + $0xb8] sm:$0xff]  ;;  %v489_v44 = vld [vmem:[#allocation5 + $0xc0] sm:$0xff]  ;;  %v493_v46 = vld [vmem:[#allocation5 + $0xd0] sm:$0xff]  ;;  %v129_v54 = vadd.f32 %v128_v41, %v477_v34  ;;  %v117_v58 = vsel %vm92_vm0, %v51_v39, 0.0  ;;  %v94_v12 = vadd.f32 %v93_v47, %v44_v38 }
  0x17   :  { %v45_v50 = vld [vmem:[#allocation2 + $0x8] sm:$0xff]  ;;  %v46_v51 = vld [vmem:[#allocation2 + $0x10] sm:$0xff]  ;;  %v498_v52 = vld [vmem:[#allocation5 + $0xd8] sm:$0xff]  ;;  %v138_v55 = vadd.f32 %v137_v42, %v479_v35  ;;  %v147_v56 = vadd.f32 %v146_v43, %v481_v36  ;;  %v156_v59 = vadd.f32 %v155_v49, %v484_v40 }
  0x18   :  { %v47_v57 = vld [vmem:[#allocation2 + $0x18] sm:$0xff]  ;;  %v130_v60 = vadd.f32 %v129_v54, %v489_v44  ;;  %v509_v63 = vld [vmem:[#allocation5 + $0xe0] sm:$0xff]  ;;  %v511_v10 = vld [vmem:[#allocation5 + $0xe8] sm:$0xff]  ;;  %v102_v16 = vadd.f32 %v101_v48, %v45_v50  ;;  %v110_v17 = vadd.f32 %v109_v53, %v46_v51  ;;  %v95_v37 = vrot.slane %v94_v12, 4 }
  0x19   :  { %v139_v61 = vadd.f32 %v138_v55, %v491_v45  ;;  %v148_v62 = vadd.f32 %v147_v56, %v493_v46  ;;  %v513_v11 = vld [vmem:[#allocation5 + $0xf0] sm:$0xff]  ;;  %v157_v21 = vadd.f32 %v156_v59, %v498_v52  ;;  %v516_v22 = vld [vmem:[#allocation5 + $0xf8] sm:$0xff]  ;;  %v118_v23 = vadd.f32 %v117_v58, %v47_v57  ;;  %v521_v31 = vld [vmem:[#allocation5 + $0x100] sm:$0xff] }
  0x1a   :  { %v131_v27 = vadd.f32 %v130_v60, %v509_v63  ;;  %v523_v32 = vld [vmem:[#allocation5 + $0x108] sm:$0xff]  ;;  %v525_v33 = vld [vmem:[#allocation5 + $0x110] sm:$0xff]  ;;  %v103_v38 = vrot.slane %v102_v16, 4  ;;  %v111_v39 = vrot.slane %v110_v17, 4  ;;  %v528_v42 = vld [vmem:[#allocation5 + $0x118] sm:$0xff]  ;;  %v161_v50 = vmul.f32 %v422_v0, %v422_v0 }
  0x1b   :  { %v140_v28 = vadd.f32 %v139_v61, %v511_v10  ;;  %v149_v29 = vadd.f32 %v148_v62, %v513_v11  ;;  %v158_v41 = vadd.f32 %v157_v21, %v516_v22  ;;  %v119_v43 = vrot.slane %v118_v23, 4  ;;  %v535_v51 = vld [vmem:[#allocation5 + $0x120] sm:$0xff]  ;;  %v537_v53 = vld [vmem:[#allocation5 + $0x128] sm:$0xff]  ;;  %v539_v54 = vld [vmem:[#allocation5 + $0x130] sm:$0xff] }
  0x1c   :  { %v132_v47 = vadd.f32 %v131_v27, %v521_v31  ;;  %v541_v55 = vadd.f32 %v95_v37, %v94_v12  ;;  %v543_v56 = vadd.f32 %v103_v38, %v102_v16  ;;  %v545_v57 = vadd.f32 %v111_v39, %v110_v17  ;;  %v548_v59 = vld [vmem:[#allocation5 + $0x138] sm:$0xff] }
  0x1d   :  { %v141_v48 = vadd.f32 %v140_v28, %v523_v32  ;;  %v150_v49 = vadd.f32 %v149_v29, %v525_v33  ;;  %v159_v58 = vadd.f32 %v158_v41, %v528_v42  ;;  %v550_v60 = vadd.f32 %v119_v43, %v118_v23 }
  0x1e   :  { %v162_v0 = vmul.f32 %v424_v1, %v424_v1  ;;  %v163_v61 = vmul.f32 %v426_v2, %v426_v2  ;;  %v165_v62 = vmul.f32 %v430_v4, %v430_v4  ;;  %v164_v12 = vmul.f32 %v428_v3, %v428_v3 }
  0x1f   :  { %v166_v16 = vmul.f32 %v432_v5, %v432_v5  ;;  %v167_v17 = vmul.f32 %v434_v6, %v434_v6  ;;  %v168_v21 = vmul.f32 %v436_v7, %v436_v7  ;;  %v567_v1 = vadd.f32 %v132_v47, %v535_v51 }
  0x20   :  { %v570_v2 = vadd.f32 %v141_v48, %v537_v53  ;;  %v573_v4 = vadd.f32 %v150_v49, %v539_v54  ;;  %v169_v3 = vmul.f32 %v438_v8, %v438_v8  ;;  %v578_v5 = vadd.f32 %v159_v58, %v548_v59 }
  0x21   :  { %v170_v6 = vmul.f32 %v440_v9, %v440_v9  ;;  %v171_v7 = vmul.f32 %v448_v13, %v448_v13  ;;  %v172_v23 = vmul.f32 %v450_v14, %v450_v14  ;;  %v173_v27 = vmul.f32 %v452_v15, %v452_v15 }
  0x22   :  { %v174_v28 = vmul.f32 %v456_v18, %v456_v18  ;;  %v175_v8 = vmul.f32 %v458_v19, %v458_v19  ;;  %v201_v29 = vadd.f32 %v165_v62, %v161_v50  ;;  %v176_v37 = vmul.f32 %v460_v20, %v460_v20 }
  0x23   :  { %v210_v9 = vadd.f32 %v166_v16, %v162_v0  ;;  %v219_v38 = vadd.f32 %v167_v17, %v163_v61  ;;  %v228_v39 = vadd.f32 %v168_v21, %v164_v12  ;;  %v177_v13 = vmul.f32 %v465_v24, %v465_v24 }
  0x24   :  { %v178_v14 = vmul.f32 %v467_v25, %v467_v25  ;;  %v179_v15 = vmul.f32 %v469_v26, %v469_v26  ;;  %v202_v18 = vadd.f32 %v201_v29, %v169_v3  ;;  %v180_v19 = vmul.f32 %v472_v30, %v472_v30 }
  0x25   :  { %v211_v41 = vadd.f32 %v210_v9, %v170_v6  ;;  %v220_v43 = vadd.f32 %v219_v38, %v171_v7  ;;  %v229_v47 = vadd.f32 %v228_v39, %v172_v23  ;;  %v181_v20 = vmul.f32 %v477_v34, %v477_v34 }
  0x26   :  { %v182_v48 = vmul.f32 %v479_v35, %v479_v35  ;;  %v183_v24 = vmul.f32 %v481_v36, %v481_v36  ;;  %v203_v25 = vadd.f32 %v202_v18, %v173_v27  ;;  %v184_v26 = vmul.f32 %v484_v40, %v484_v40 }
  0x27   :  { %v212_v49 = vadd.f32 %v211_v41, %v174_v28  ;;  %v221_v50 = vadd.f32 %v220_v43, %v175_v8  ;;  %v230_v58 = vadd.f32 %v229_v47, %v176_v37  ;;  %v185_v30 = vmul.f32 %v489_v44, %v489_v44 }
  0x28   :  { %v186_v0 = vmul.f32 %v491_v45, %v491_v45  ;;  %v187_v34 = vmul.f32 %v493_v46, %v493_v46  ;;  %v204_v35 = vadd.f32 %v203_v25, %v177_v13  ;;  %v188_v36 = vmul.f32 %v498_v52, %v498_v52 }
  0x29   :  { %v213_v61 = vadd.f32 %v212_v49, %v178_v14  ;;  %v222_v62 = vadd.f32 %v221_v50, %v179_v15  ;;  %v231_v12 = vadd.f32 %v230_v58, %v180_v19  ;;  %v189_v40 = vmul.f32 %v509_v63, %v509_v63 }
  0x2a   :  { %v190_v16 = vmul.f32 %v511_v10, %v511_v10  ;;  %v191_v44 = vmul.f32 %v513_v11, %v513_v11  ;;  %v205_v45 = vadd.f32 %v204_v35, %v181_v20  ;;  %v192_v46 = vmul.f32 %v516_v22, %v516_v22 }
  0x2b   :  { %v214_v17 = vadd.f32 %v213_v61, %v182_v48  ;;  %v223_v21 = vadd.f32 %v222_v62, %v183_v24  ;;  %v232_v3 = vadd.f32 %v231_v12, %v184_v26  ;;  %v193_v52 = vmul.f32 %v521_v31, %v521_v31 }
  0x2c   :  { %v194_v6 = vmul.f32 %v523_v32, %v523_v32  ;;  %v195_v63 = vmul.f32 %v525_v33, %v525_v33  ;;  %v206_v10 = vadd.f32 %v205_v45, %v185_v30  ;;  %v196_v11 = vmul.f32 %v528_v42, %v528_v42 }
  0x2d   :  { %v215_v7 = vadd.f32 %v214_v17, %v186_v0  ;;  %v224_v23 = vadd.f32 %v223_v21, %v187_v34  ;;  %v233_v27 = vadd.f32 %v232_v3, %v188_v36  ;;  %v197_v22 = vmul.f32 %v535_v51, %v535_v51 }
  0x2e   :  { %v198_v28 = vmul.f32 %v537_v53, %v537_v53  ;;  %v199_v31 = vmul.f32 %v539_v54, %v539_v54  ;;  %v207_v32 = vadd.f32 %v206_v10, %v189_v40  ;;  %v200_v33 = vmul.f32 %v548_v59, %v548_v59 }
  0x2f   :  { %v216_v8 = vadd.f32 %v215_v7, %v190_v16  ;;  %v225_v29 = vadd.f32 %v224_v23, %v191_v44  ;;  %v234_v37 = vadd.f32 %v233_v27, %v192_v46  ;;  %v237_v9 = vmul.f32 %v567_v1, %v567_v1 }
  0x30   :  { %v208_v42 = vadd.f32 %v207_v32, %v193_v52  ;;  %v238_v51 = vmul.f32 %v570_v2, %v570_v2  ;;  %v239_v53 = vmul.f32 %v573_v4, %v573_v4  ;;  %v240_v13 = vmul.f32 %v578_v5, %v578_v5 }
  0x31   :  { %v217_v38 = vadd.f32 %v216_v8, %v194_v6  ;;  %v226_v39 = vadd.f32 %v225_v29, %v195_v63  ;;  %v235_v54 = vadd.f32 %v234_v37, %v196_v11  ;;  %v97_v19 = vrot.slane %v541_v55, 2 }
  0x32   :  { %v209_v59 = vadd.f32 %v208_v42, %v197_v22  ;;  %v105_v1 = vrot.slane %v543_v56, 2  ;;  %v113_v41 = vrot.slane %v545_v57, 2  ;;  %v121_v43 = vrot.slane %v550_v60, 2 }
  0x33   :  { %v218_v14 = vadd.f32 %v217_v38, %v198_v28  ;;  %v227_v15 = vadd.f32 %v226_v39, %v199_v31  ;;  %v236_v18 = vadd.f32 %v235_v54, %v200_v33  ;;  %v98_v26 = vadd.f32 %v97_v19, %v541_v55 }
  0x34   :  { %v241_v2 = vsub.f32 %v237_v9, %v209_v59  ;;  %v106_v49 = vadd.f32 %v105_v1, %v543_v56  ;;  %v114_v50 = vadd.f32 %v113_v41, %v545_v57  ;;  %v122_v30 = vadd.f32 %v121_v43, %v550_v60 }
  0x35   :  { %v242_v4 = vsub.f32 %v238_v51, %v218_v14  ;;  %v243_v47 = vsub.f32 %v239_v53, %v227_v15  ;;  %v244_v20 = vsub.f32 %v240_v13, %v236_v18  ;;  %v99_v40 = vrot.slane %v98_v26, 1 }
  0x36   :  { %v245_v48 = vrot.slane %v241_v2, 4  ;;  %v107_v16 = vrot.slane %v106_v49, 1  ;;  %v115_v44 = vrot.slane %v114_v50, 1  ;;  %v123_v46 = vrot.slane %v122_v30, 1 }
  0x37   :  { %v251_v24 = vrot.slane %v242_v4, 4  ;;  %v257_v25 = vrot.slane %v243_v47, 4  ;;  %v263_v5 = vrot.slane %v244_v20, 4  ;;  %v100_v60 = vadd.f32 %v99_v40, %v98_v26 }
  0x38   :  { %v246_v58 = vadd.f32 %v245_v48, %v241_v2  ;;  %v108_v6 = vadd.f32 %v107_v16, %v106_v49  ;;  %v116_v63 = vadd.f32 %v115_v44, %v114_v50  ;;  %v124_v11 = vadd.f32 %v123_v46, %v122_v30 }
  0x39   :  { %v252_v0 = vadd.f32 %v251_v24, %v242_v4  ;;  %v258_v34 = vadd.f32 %v257_v25, %v243_v47  ;;  %v264_v35 = vadd.f32 %v263_v5, %v244_v20  ;;  %v290_v33 = vlaneseq }
  0x3a   :  { %v247_v36 = vrot.slane %v246_v58, 2 }
  0x3b   :  { %v253_v61 = vrot.slane %v252_v0, 2  ;;  %v259_v62 = vrot.slane %v258_v34, 2  ;;  %v265_v12 = vrot.slane %v264_v35, 2  ;;  %vm292_vm3 = vcmp.lt.s32.totalorder %v290_v33, 512 }
  0x3c   :  { %v248_v45 = vadd.f32 %v247_v36, %v246_v58 }
  0x3d   :  { %v254_v55 = vadd.f32 %v253_v61, %v252_v0  ;;  %v260_v17 = vadd.f32 %v259_v62, %v258_v34  ;;  %v266_v56 = vadd.f32 %v265_v12, %v264_v35 }
  0x3e   :  { %v249_v21 = vrot.slane %v248_v45, 1 }
  0x3f   :  { %v255_v57 = vrot.slane %v254_v55, 1  ;;  %v261_v3 = vrot.slane %v260_v17, 1  ;;  %v267_v52 = vrot.slane %v266_v56, 1 }
  0x40   :  { %v250_v10 = vadd.f32 %v249_v21, %v248_v45 }
  0x41   :  { %v256_v7 = vadd.f32 %v255_v57, %v254_v55  ;;  %v262_v23 = vadd.f32 %v261_v3, %v260_v17  ;;  %v268_v27 = vadd.f32 %v267_v52, %v266_v56 }
  0x42   :  { %v269_v22 = vmul.f32 0.5, %v250_v10 }
  0x43   :  { %v270_v28 = vmul.f32 0.5, %v256_v7  ;;  %v271_v31 = vmul.f32 0.5, %v262_v23  ;;  %v272_v32 = vmul.f32 0.5, %v268_v27 }
  0x44   :  { %v273_v8 = vadd.f32 %v269_v22, %v100_v60 }
  0x45   :  { %v274_v29 = vadd.f32 %v270_v28, %v108_v6  ;;  %v275_v37 = vadd.f32 %v271_v31, %v116_v63  ;;  %v276_v42 = vadd.f32 %v272_v32, %v124_v11 }
  0x47   :  { %v281_v9 = vrot.slane %v274_v29, 7  ;;  %v282_v51 = vrot.slane %v275_v37, 6  ;;  %v283_v53 = vrot.slane %v276_v42, 5 }
  0x49   :  { %v285_v38 = vsel %vm284_vm1, %v273_v8, %v281_v9  ;;  %v287_v39 = vsel %vm286_vm2, %v282_v51, %v283_v53 }
  0x4a   :  { %v288_v54 = vsel %vm92_vm0, %v285_v38, %v287_v39 }
  0x4b   :  { %294 = vst.msk [vmem:[#allocation7] sm:$0xf] %vm292_vm3, %v288_v54 }
  0x4c   :  { %305 = dma.vmem_to_hbm [thread:$0]  %s301_s1, 64, %s303_s23, [#allocation4]  }
  0x4d   :  { %394 = dma.done.wait [#allocation4], 64  }
  0x4e   :  { %395 = vsyncadd [#allocation4], 4294967232 }
  0x4f   :  { %310 = vsyncpa [#allocation3], 1 }
  0x50   :  { %311 = vsyncpa [#allocation6], 1 }
  0x51   :  { %312 = vsyncpa [#allocation4], 1 }

</bundles_post_ra>
